<compile_context>
chip_gen: v5e
topology: v5e:2x2
jax: 0.10.0
libtpu: 0.0.40
codegen_flags: <defaults>
</compile_context>

<pallas_src>
import jax
import jax.numpy as jnp
from jax import lax
from jax.experimental import pallas as pl
from jax.experimental.pallas import tpu as pltpu


def interp_matrix_align_corners(n_in, n_out):
    """(n_out, n_in) matrix implementing 1D bilinear resize, align_corners=True."""
    denom = max(n_out - 1, 1)          # guard degenerate n_out == 1
    p = jnp.arange(n_out, dtype=jnp.float32)
    s = p * (n_in - 1) / denom
    i0 = jnp.clip(jnp.floor(s).astype(jnp.int32), 0, n_in - 1)
    i1 = jnp.clip(i0 + 1, 0, n_in - 1)
    frac = s - i0.astype(jnp.float32)
    A = jnp.zeros((n_out, n_in), jnp.float32)
    A = A.at[jnp.arange(n_out), i0].add(1.0 - frac)
    A = A.at[jnp.arange(n_out), i1].add(frac)
    return A


def _vmem_limit_bytes():
    """Scoped-VMEM limit from the chip (v7x: 64 MiB physical, v5e/v6e: 128 MiB)."""
    try:
        cap = getattr(pltpu.get_tpu_info(), "vmem_capacity_bytes", None)
        if cap:
            return int(min(cap * 3 // 4, 96 * 1024 * 1024))
    except Exception:
        pass
    return 32 * 1024 * 1024


@jax.jit
def feature_fusion_block_sphe(x0, x1, params):
    """Pallas implementation.  x0, x1: (B, C, H, W) float32.  Returns NCHW."""
    B, C, H, W = x0.shape
    Co = C                       # expand=False -> out_features == features
    WC = W * C
    H2, W2 = 2 * H, 2 * W

    (w1a, b1a, w1b, b1b, w2a, b2a, w2b, b2b, wout, bout) = params

    # ---- batch blocking: stack Bblk examples into the matmul M dimension ----
    # Target ~512 rows (>=256 fills the 256-row MXU on v6e/v7x; two 128-row
    # passes on v5e).  Pick the divisor of B whose Bblk*H is closest to the
    # target from either side (no hard cap).  Note: a prime B simply falls
    # back to Bblk in {1, B}, which is a perf cliff, not a bug.
    target_m = 512
    divs = [d for d in range(1, B + 1) if B % d == 0]
    Bblk = min(divs, key=lambda d: (abs(d * H - target_m), -d))
    # v7x megacore: prefer >=2 grid steps when it does not drop M below 256.
    if B // Bblk == 1:
        for d in sorted(divs, reverse=True):
            if d < Bblk and d * H >= 256:
                Bblk = d
                break
    nblk = B // Bblk
    M = Bblk * H

    # ---- fused banded conv matrices: all 9 taps folded into one (3*WC, WC) --
    # Rows [ky*WC:(ky+1)*WC] hold the band for vertical tap ky (kx shifts are
    # baked in via kron(shift_W, W_k)).  Stored in bf16; f32 accumulation.
    def fused_conv_mat(w):       # w: (Cout, Cin, 3, 3) -> (3*WC, WC) bf16
        blocks = []
        for ky in range(3):
            K = jnp.zeros((WC, WC), jnp.float32)
            for kx in range(3):
                # shift along W with zero edges: S[w_in, w_out]=1 iff
                # w_in = w_out + kx - 1 (matches zero width-padding)
                S = jnp.eye(W, k=1 - kx, dtype=jnp.float32)
                K = K + jnp.kron(S, w[:, :, ky, kx].T)
            blocks.append(K)
        return jnp.concatenate(blocks, axis=0).astype(jnp.bfloat16)

    Kf1a, Kf1b = fused_conv_mat(w1a), fused_conv_mat(w1b)
    Kf2a, Kf2b = fused_conv_mat(w2a), fused_conv_mat(w2b)
    tb1a = jnp.tile(b1a, W)[None, :]
    tb1b = jnp.tile(b1b, W)[None, :]
    tb2a = jnp.tile(b2a, W)[None, :]
    tb2b = jnp.tile(b2b, W)[None, :]

    # ---- upsample + out_conv matrices ----
    # Width-upsample and the 1x1 out_conv stay fused (MwKout); the height
    # upsample uses the shared (2H, H) Ah per example (no kron(I_Bblk, Ah)).
    Ah16 = interp_matrix_align_corners(H, H2).astype(jnp.bfloat16)      # (2H, H)
    Aw = interp_matrix_align_corners(W, W2)                             # (2W, W)
    MwKout16 = jnp.kron(Aw.T, wout.T).astype(jnp.bfloat16)              # (WC, 2W*Co)
    tbout = jnp.tile(bout, W2)[None, :]                                 # (1, 2W*Co)

    # NCHW -> (B, H, W*C).  NOTE(perf): production callers should provide NHWC
    # so these standalone HBM transpose passes disappear / fuse upstream.
    def to2d(x):
        return jnp.transpose(x, (0, 2, 3, 1)).reshape(B, H, WC)

    x0f, x1f = to2d(x0), to2d(x1)

    def kernel(x0_ref, x1_ref,
               k1a_ref, b1a_ref, k1b_ref, b1b_ref,
               k2a_ref, b2a_ref, k2b_ref, b2b_ref,
               ah_ref, mwk_ref, bout_ref,
               out_ref, win_ref):

        def conv3x3(x2d, kf_ref, b_ref):
            # x2d: (M, WC) f32 activation.  Build the (M, 3*WC) window buffer
            # (row-above | row | row-below, zero-padded at the H edges) once in
            # bf16, then a single K=3*WC matmul with f32 accumulation.
            x3 = x2d.reshape(Bblk, H, WC)
            zrow = jnp.zeros((Bblk, 1, WC), jnp.float32)
            up = jnp.concatenate([zrow, x3[:, :H - 1, :]], axis=1)   # in[h-1]
            dn = jnp.concatenate([x3[:, 1:, :], zrow], axis=1)       # in[h+1]
            win_ref[:, :, 0 * WC:1 * WC] = up.astype(jnp.bfloat16)
            win_ref[:, :, 1 * WC:2 * WC] = x3.astype(jnp.bfloat16)
            win_ref[:, :, 2 * WC:3 * WC] = dn.astype(jnp.bfloat16)
            acc = jnp.dot(win_ref[...].reshape(M, 3 * WC), kf_ref[...],
                          preferred_element_type=jnp.float32)
            return acc + b_ref[...]

        x0v = x0_ref[...].reshape(M, WC)
        x1v = x1_ref[...].reshape(M, WC)

        # resConfUnit1 (bn=False): relu -> conv -> relu -> conv, + skip; + x0
        t = jnp.maximum(x1v, 0.0)
        t = conv3x3(t, k1a_ref, b1a_ref)
        t = jnp.maximum(t, 0.0)
        t = conv3x3(t, k1b_ref, b1b_ref)
        out = x0v + (t + x1v)

        # resConfUnit2 (DeformConv2d_sphe approximated as a plain 3x3 conv)
        t = jnp.maximum(out, 0.0)
        t = conv3x3(t, k2a_ref, b2a_ref)
        t = jnp.maximum(t, 0.0)
        t = conv3x3(t, k2b_ref, b2b_ref)
        out = out + t

        # Fused width-upsample + 1x1 out_conv FIRST (keeps the full M rows on
        # the MXU), then the height upsample per example (linear maps on
        # independent axes commute).  Bias added at the very end.
        z = jnp.dot(out.astype(jnp.bfloat16), mwk_ref[...],
                    preferred_element_type=jnp.float32)               # (M, 2W*Co)
        z16 = z.reshape(Bblk, H, W2 * Co).astype(jnp.bfloat16)
        ah = ah_ref[...]
        bias = bout_ref[...]
        for b in range(Bblk):                                          # static unroll
            yb = jnp.dot(ah, z16[b], preferred_element_type=jnp.float32)
            out_ref[b] = yb + bias

    grid_spec = pltpu.PrefetchScalarGridSpec(
        num_scalar_prefetch=0,
        grid=(nblk,),
        in_specs=[
            pl.BlockSpec((Bblk, H, WC), lambda b: (b, 0, 0)),
            pl.BlockSpec((Bblk, H, WC), lambda b: (b, 0, 0)),
            pl.BlockSpec((3 * WC, WC), lambda b: (0, 0)),
            pl.BlockSpec((1, WC), lambda b: (0, 0)),
            pl.BlockSpec((3 * WC, WC), lambda b: (0, 0)),
            pl.BlockSpec((1, WC), lambda b: (0, 0)),
            pl.BlockSpec((3 * WC, WC), lambda b: (0, 0)),
            pl.BlockSpec((1, WC), lambda b: (0, 0)),
            pl.BlockSpec((3 * WC, WC), lambda b: (0, 0)),
            pl.BlockSpec((1, WC), lambda b: (0, 0)),
            pl.BlockSpec((H2, H), lambda b: (0, 0)),
            pl.BlockSpec((WC, W2 * Co), lambda b: (0, 0)),
            pl.BlockSpec((1, W2 * Co), lambda b: (0, 0)),
        ],
        out_specs=pl.BlockSpec((Bblk, H2, W2 * Co), lambda b: (b, 0, 0)),
        scratch_shapes=[pltpu.VMEM((Bblk, H, 3 * WC), jnp.bfloat16)],
    )

    flops = (4 * 2 * B * H * (3 * WC) * WC          # 4 convs, one K=3*WC matmul each
             + 2 * B * H * WC * (W2 * Co)           # fused width-upsample + 1x1
             + 2 * B * H2 * H * (W2 * Co))          # height upsample (linear in B)
    bytes_accessed = (4 * 2 * B * H * WC                                  # x0, x1 f32
                      + 2 * (4 * 3 * WC * WC + WC * W2 * Co + H2 * H)     # bf16 weights
                      + 4 * (4 * WC + W2 * Co)                            # f32 biases
                      + 4 * B * H2 * W2 * Co)                             # f32 output
    cost = pl.CostEstimate(flops=int(flops), transcendentals=0,
                           bytes_accessed=int(bytes_accessed))

    out2d = pl.pallas_call(
        kernel,
        out_shape=jax.ShapeDtypeStruct((B, H2, W2 * Co), jnp.float32),
        grid_spec=grid_spec,
        compiler_params=pltpu.CompilerParams(
            dimension_semantics=("parallel",),
            vmem_limit_bytes=_vmem_limit_bytes()),
        cost_estimate=cost,
    )(x0f, x1f, Kf1a, tb1a, Kf1b, tb1b, Kf2a, tb2a, Kf2b, tb2b,
      Ah16, MwKout16, tbout)

    # back to NCHW (see NOTE(perf) at to2d)
    return out2d.reshape(B, H2, W2, Co).transpose(0, 3, 1, 2)


def ref_forward(x0, x1, params):
    """Pure-JAX f32 reference (same deform-conv approximation)."""
    (w1a, b1a, w1b, b1b, w2a, b2a, w2b, b2b, wout, bout) = params
    relu = jax.nn.relu

    def conv3x3(x, w, b):
        y = lax.conv_general_dilated(
            x, w, (1, 1), ((1, 1), (1, 1)),
            dimension_numbers=('NCHW', 'OIHW', 'NCHW'))
        return y + b[None, :, None, None]

    def rcu(x, wA, bA, wB, bB):
        t = relu(x)
        t = conv3x3(t, wA, bA)
        t = relu(t)
        t = conv3x3(t, wB, bB)
        return t + x

    out = x0 + rcu(x1, w1a, b1a, w1b, b1b)
    out = rcu(out, w2a, b2a, w2b, b2b)
    B, C, H, W = out.shape
    Ah = interp_matrix_align_corners(H, 2 * H)
    Aw = interp_matrix_align_corners(W, 2 * W)
    out = jnp.einsum('ph,bchw->bcpw', Ah, out)
    out = jnp.einsum('qw,bcpw->bcpq', Aw, out)
    out = jnp.einsum('oc,bchw->bohw', wout, out) + bout[None, :, None, None]
    return out


if __name__ == "__main__":
    B, C, H, W = 2, 8, 16, 16      # features=8 -> W*C = 128 (lane friendly)
    key = jax.random.PRNGKey(0)
    ks = jax.random.split(key, 12)

    w1a = 0.1 * jax.random.normal(ks[0], (C, C, 3, 3), jnp.float32)
    b1a = 0.1 * jax.random.normal(ks[1], (C,), jnp.float32)
    w1b = 0.1 * jax.random.normal(ks[2], (C, C, 3, 3), jnp.float32)
    b1b = 0.1 * jax.random.normal(ks[3], (C,), jnp.float32)
    w2a = 0.1 * jax.random.normal(ks[4], (C, C, 3, 3), jnp.float32)
    b2a = 0.1 * jax.random.normal(ks[5], (C,), jnp.float32)
    w2b = 0.1 * jax.random.normal(ks[6], (C, C, 3, 3), jnp.float32)
    b2b = 0.1 * jax.random.normal(ks[7], (C,), jnp.float32)
    wout = 0.1 * jax.random.normal(ks[8], (C, C), jnp.float32)   # 1x1 conv
    bout = 0.1 * jax.random.normal(ks[9], (C,), jnp.float32)
    params = (w1a, b1a, w1b, b1b, w2a, b2a, w2b, b2b, wout, bout)

    x0 = jax.random.normal(ks[10], (B, C, H, W), jnp.float32)
    x1 = jax.random.normal(ks[11], (B, C, H, W), jnp.float32)

    out = feature_fusion_block_sphe(x0, x1, params)
    out = jax.block_until_ready(out)

    ref = jax.block_until_ready(ref_forward(x0, x1, params))
    assert out.shape == (B, C, 2 * H, 2 * W), out.shape
    # bf16 matmul operands with f32 accumulation: expected max error vs the
    # f32 reference is ~5e-3 at these magnitudes; 1e-2 gives safe margin
    # (the pure-f32 variant of this kernel held 2e-3).
    assert jnp.allclose(out, ref, rtol=1e-2, atol=1e-2), \
        float(jnp.max(jnp.abs(out - ref)))

    print("KERNEL_OK")
</pallas_src>

<mosaic_0001>
module attributes {stable_mosaic.version = 11 : i64} {
  func.func @kernel(%arg0: i32, %arg1: memref<2x16x128xf32, #tpu.memory_space<vmem>>, %arg2: memref<2x16x128xf32, #tpu.memory_space<vmem>>, %arg3: memref<384x128xbf16, #tpu.memory_space<vmem>>, %arg4: memref<1x128xf32, #tpu.memory_space<vmem>>, %arg5: memref<384x128xbf16, #tpu.memory_space<vmem>>, %arg6: memref<1x128xf32, #tpu.memory_space<vmem>>, %arg7: memref<384x128xbf16, #tpu.memory_space<vmem>>, %arg8: memref<1x128xf32, #tpu.memory_space<vmem>>, %arg9: memref<384x128xbf16, #tpu.memory_space<vmem>>, %arg10: memref<1x128xf32, #tpu.memory_space<vmem>>, %arg11: memref<32x16xbf16, #tpu.memory_space<vmem>>, %arg12: memref<128x256xbf16, #tpu.memory_space<vmem>>, %arg13: memref<1x256xf32, #tpu.memory_space<vmem>>, %arg14: memref<2x32x256xf32, #tpu.memory_space<vmem>>, %arg15: memref<2x16x384xbf16, #tpu.memory_space<vmem>>) attributes {dimension_semantics = [#tpu.dimension_semantics<parallel>], iteration_bounds = array<i64: 1>, scalar_prefetch = 0 : i64, scratch_operands = 1 : i64, tpu.core_type = #tpu.core_type<tc>, window_params = [{transform_indices = @transform_0, window_bounds = array<i64: 2, 16, 128>}, {transform_indices = @transform_1, window_bounds = array<i64: 2, 16, 128>}, {pipeline_mode = #tpu.pipeline_mode<synchronous>, transform_indices = @transform_2, window_bounds = array<i64: 384, 128>}, {pipeline_mode = #tpu.pipeline_mode<synchronous>, transform_indices = @transform_3, window_bounds = array<i64: 1, 128>}, {pipeline_mode = #tpu.pipeline_mode<synchronous>, transform_indices = @transform_4, window_bounds = array<i64: 384, 128>}, {pipeline_mode = #tpu.pipeline_mode<synchronous>, transform_indices = @transform_5, window_bounds = array<i64: 1, 128>}, {pipeline_mode = #tpu.pipeline_mode<synchronous>, transform_indices = @transform_6, window_bounds = array<i64: 384, 128>}, {pipeline_mode = #tpu.pipeline_mode<synchronous>, transform_indices = @transform_7, window_bounds = array<i64: 1, 128>}, {pipeline_mode = #tpu.pipeline_mode<synchronous>, transform_indices = @transform_8, window_bounds = array<i64: 384, 128>}, {pipeline_mode = #tpu.pipeline_mode<synchronous>, transform_indices = @transform_9, window_bounds = array<i64: 1, 128>}, {pipeline_mode = #tpu.pipeline_mode<synchronous>, transform_indices = @transform_10, window_bounds = array<i64: 32, 16>}, {pipeline_mode = #tpu.pipeline_mode<synchronous>, transform_indices = @transform_11, window_bounds = array<i64: 128, 256>}, {pipeline_mode = #tpu.pipeline_mode<synchronous>, transform_indices = @transform_12, window_bounds = array<i64: 1, 256>}, {transform_indices = @transform_13, window_bounds = array<i64: 2, 32, 256>}]} {
    %c0 = arith.constant 0 : index
    %c0_0 = arith.constant 0 : index
    %c0_1 = arith.constant 0 : index
    %0 = vector.load %arg1[%c0, %c0_0, %c0_1] : memref<2x16x128xf32, #tpu.memory_space<vmem>>, vector<2x16x128xf32>
    %1 = vector.shape_cast %0 : vector<2x16x128xf32> to vector<32x128xf32>
    %c0_2 = arith.constant 0 : index
    %c0_3 = arith.constant 0 : index
    %c0_4 = arith.constant 0 : index
    %2 = vector.load %arg2[%c0_2, %c0_3, %c0_4] : memref<2x16x128xf32, #tpu.memory_space<vmem>>, vector<2x16x128xf32>
    %3 = vector.shape_cast %2 : vector<2x16x128xf32> to vector<32x128xf32>
    %cst = arith.constant 0.000000e+00 : f32
    %4 = vector.broadcast %cst : f32 to vector<32x128xf32>
    %5 = arith.maximumf %3, %4 : vector<32x128xf32>
    %6 = vector.shape_cast %5 : vector<32x128xf32> to vector<2x16x128xf32>
    %cst_5 = arith.constant 0.000000e+00 : f32
    %7 = vector.broadcast %cst_5 : f32 to vector<2x1x128xf32>
    %8 = vector.extract_strided_slice %6 {offsets = [0, 0, 0], sizes = [2, 15, 128], strides = [1, 1, 1]} : vector<2x16x128xf32> to vector<2x15x128xf32>
    %9 = tpu.concatenate %7, %8 in 1 : vector<2x1x128xf32>, vector<2x15x128xf32> -> vector<2x16x128xf32>
    %10 = vector.extract_strided_slice %6 {offsets = [0, 1, 0], sizes = [2, 15, 128], strides = [1, 1, 1]} : vector<2x16x128xf32> to vector<2x15x128xf32>
    %11 = tpu.concatenate %10, %7 in 1 : vector<2x15x128xf32>, vector<2x1x128xf32> -> vector<2x16x128xf32>
    %12 = arith.truncf %9 : vector<2x16x128xf32> to vector<2x16x128xbf16>
    %c0_6 = arith.constant 0 : index
    %c0_7 = arith.constant 0 : index
    %c0_8 = arith.constant 0 : index
    %13 = vector.load %arg15[%c0_6, %c0_7, %c0_8] : memref<2x16x384xbf16, #tpu.memory_space<vmem>>, vector<2x16x128xbf16>
    tpu.vector_store %arg15[%c0_6, %c0_7, %c0_8], %12 {strides = array<i32>} : memref<2x16x384xbf16, #tpu.memory_space<vmem>>, vector<2x16x128xbf16>,
    %14 = arith.truncf %6 : vector<2x16x128xf32> to vector<2x16x128xbf16>
    %c0_9 = arith.constant 0 : index
    %c0_10 = arith.constant 0 : index
    %c128 = arith.constant 128 : index
    %15 = vector.load %arg15[%c0_9, %c0_10, %c128] : memref<2x16x384xbf16, #tpu.memory_space<vmem>>, vector<2x16x128xbf16>
    tpu.vector_store %arg15[%c0_9, %c0_10, %c128], %14 {strides = array<i32>} : memref<2x16x384xbf16, #tpu.memory_space<vmem>>, vector<2x16x128xbf16>,
    %16 = arith.truncf %11 : vector<2x16x128xf32> to vector<2x16x128xbf16>
    %c0_11 = arith.constant 0 : index
    %c0_12 = arith.constant 0 : index
    %c256 = arith.constant 256 : index
    %17 = vector.load %arg15[%c0_11, %c0_12, %c256] : memref<2x16x384xbf16, #tpu.memory_space<vmem>>, vector<2x16x128xbf16>
    tpu.vector_store %arg15[%c0_11, %c0_12, %c256], %16 {strides = array<i32>} : memref<2x16x384xbf16, #tpu.memory_space<vmem>>, vector<2x16x128xbf16>,
    %c0_13 = arith.constant 0 : index
    %c0_14 = arith.constant 0 : index
    %c0_15 = arith.constant 0 : index
    %18 = vector.load %arg15[%c0_13, %c0_14, %c0_15] : memref<2x16x384xbf16, #tpu.memory_space<vmem>>, vector<2x16x384xbf16>
    %19 = vector.shape_cast %18 : vector<2x16x384xbf16> to vector<32x384xbf16>
    %c0_16 = arith.constant 0 : index
    %c0_17 = arith.constant 0 : index
    %20 = vector.load %arg3[%c0_16, %c0_17] : memref<384x128xbf16, #tpu.memory_space<vmem>>, vector<384x128xbf16>
    %cst_18 = arith.constant dense<0.000000e+00> : vector<32x128xf32>
    %21 = tpu.matmul %19, %20, %cst_18 {dimension_numbers = #tpu.dot_dimension_numbers<[1], [0], [0], [1], [0, 0, 1, 1], [], []>} : vector<32x384xbf16>, vector<384x128xbf16>, vector<32x128xf32> -> vector<32x128xf32>
    %c0_19 = arith.constant 0 : index
    %c0_20 = arith.constant 0 : index
    %22 = vector.load %arg4[%c0_19, %c0_20] : memref<1x128xf32, #tpu.memory_space<vmem>>, vector<1x128xf32>
    %23 = vector.broadcast %22 : vector<1x128xf32> to vector<32x128xf32>
    %24 = arith.addf %21, %23 : vector<32x128xf32>
    %cst_21 = arith.constant 0.000000e+00 : f32
    %25 = vector.broadcast %cst_21 : f32 to vector<32x128xf32>
    %26 = arith.maximumf %24, %25 : vector<32x128xf32>
    %27 = vector.shape_cast %26 : vector<32x128xf32> to vector<2x16x128xf32>
    %cst_22 = arith.constant 0.000000e+00 : f32
    %28 = vector.broadcast %cst_22 : f32 to vector<2x1x128xf32>
    %29 = vector.extract_strided_slice %27 {offsets = [0, 0, 0], sizes = [2, 15, 128], strides = [1, 1, 1]} : vector<2x16x128xf32> to vector<2x15x128xf32>
    %30 = tpu.concatenate %28, %29 in 1 : vector<2x1x128xf32>, vector<2x15x128xf32> -> vector<2x16x128xf32>
    %31 = vector.extract_strided_slice %27 {offsets = [0, 1, 0], sizes = [2, 15, 128], strides = [1, 1, 1]} : vector<2x16x128xf32> to vector<2x15x128xf32>
    %32 = tpu.concatenate %31, %28 in 1 : vector<2x15x128xf32>, vector<2x1x128xf32> -> vector<2x16x128xf32>
    %33 = arith.truncf %30 : vector<2x16x128xf32> to vector<2x16x128xbf16>
    %c0_23 = arith.constant 0 : index
    %c0_24 = arith.constant 0 : index
    %c0_25 = arith.constant 0 : index
    %34 = vector.load %arg15[%c0_23, %c0_24, %c0_25] : memref<2x16x384xbf16, #tpu.memory_space<vmem>>, vector<2x16x128xbf16>
    tpu.vector_store %arg15[%c0_23, %c0_24, %c0_25], %33 {strides = array<i32>} : memref<2x16x384xbf16, #tpu.memory_space<vmem>>, vector<2x16x128xbf16>,
    %35 = arith.truncf %27 : vector<2x16x128xf32> to vector<2x16x128xbf16>
    %c0_26 = arith.constant 0 : index
    %c0_27 = arith.constant 0 : index
    %c128_28 = arith.constant 128 : index
    %36 = vector.load %arg15[%c0_26, %c0_27, %c128_28] : memref<2x16x384xbf16, #tpu.memory_space<vmem>>, vector<2x16x128xbf16>
    tpu.vector_store %arg15[%c0_26, %c0_27, %c128_28], %35 {strides = array<i32>} : memref<2x16x384xbf16, #tpu.memory_space<vmem>>, vector<2x16x128xbf16>,
    %37 = arith.truncf %32 : vector<2x16x128xf32> to vector<2x16x128xbf16>
    %c0_29 = arith.constant 0 : index
    %c0_30 = arith.constant 0 : index
    %c256_31 = arith.constant 256 : index
    %38 = vector.load %arg15[%c0_29, %c0_30, %c256_31] : memref<2x16x384xbf16, #tpu.memory_space<vmem>>, vector<2x16x128xbf16>
    tpu.vector_store %arg15[%c0_29, %c0_30, %c256_31], %37 {strides = array<i32>} : memref<2x16x384xbf16, #tpu.memory_space<vmem>>, vector<2x16x128xbf16>,
    %c0_32 = arith.constant 0 : index
    %c0_33 = arith.constant 0 : index
    %c0_34 = arith.constant 0 : index
    %39 = vector.load %arg15[%c0_32, %c0_33, %c0_34] : memref<2x16x384xbf16, #tpu.memory_space<vmem>>, vector<2x16x384xbf16>
    %40 = vector.shape_cast %39 : vector<2x16x384xbf16> to vector<32x384xbf16>
    %c0_35 = arith.constant 0 : index
    %c0_36 = arith.constant 0 : index
    %41 = vector.load %arg5[%c0_35, %c0_36] : memref<384x128xbf16, #tpu.memory_space<vmem>>, vector<384x128xbf16>
    %cst_37 = arith.constant dense<0.000000e+00> : vector<32x128xf32>
    %42 = tpu.matmul %40, %41, %cst_37 {dimension_numbers = #tpu.dot_dimension_numbers<[1], [0], [0], [1], [0, 0, 1, 1], [], []>} : vector<32x384xbf16>, vector<384x128xbf16>, vector<32x128xf32> -> vector<32x128xf32>
    %c0_38 = arith.constant 0 : index
    %c0_39 = arith.constant 0 : index
    %43 = vector.load %arg6[%c0_38, %c0_39] : memref<1x128xf32, #tpu.memory_space<vmem>>, vector<1x128xf32>
    %44 = vector.broadcast %43 : vector<1x128xf32> to vector<32x128xf32>
    %45 = arith.addf %42, %44 : vector<32x128xf32>
    %46 = arith.addf %45, %3 : vector<32x128xf32>
    %47 = arith.addf %1, %46 : vector<32x128xf32>
    %cst_40 = arith.constant 0.000000e+00 : f32
    %48 = vector.broadcast %cst_40 : f32 to vector<32x128xf32>
    %49 = arith.maximumf %47, %48 : vector<32x128xf32>
    %50 = vector.shape_cast %49 : vector<32x128xf32> to vector<2x16x128xf32>
    %cst_41 = arith.constant 0.000000e+00 : f32
    %51 = vector.broadcast %cst_41 : f32 to vector<2x1x128xf32>
    %52 = vector.extract_strided_slice %50 {offsets = [0, 0, 0], sizes = [2, 15, 128], strides = [1, 1, 1]} : vector<2x16x128xf32> to vector<2x15x128xf32>
    %53 = tpu.concatenate %51, %52 in 1 : vector<2x1x128xf32>, vector<2x15x128xf32> -> vector<2x16x128xf32>
    %54 = vector.extract_strided_slice %50 {offsets = [0, 1, 0], sizes = [2, 15, 128], strides = [1, 1, 1]} : vector<2x16x128xf32> to vector<2x15x128xf32>
    %55 = tpu.concatenate %54, %51 in 1 : vector<2x15x128xf32>, vector<2x1x128xf32> -> vector<2x16x128xf32>
    %56 = arith.truncf %53 : vector<2x16x128xf32> to vector<2x16x128xbf16>
    %c0_42 = arith.constant 0 : index
    %c0_43 = arith.constant 0 : index
    %c0_44 = arith.constant 0 : index
    %57 = vector.load %arg15[%c0_42, %c0_43, %c0_44] : memref<2x16x384xbf16, #tpu.memory_space<vmem>>, vector<2x16x128xbf16>
    tpu.vector_store %arg15[%c0_42, %c0_43, %c0_44], %56 {strides = array<i32>} : memref<2x16x384xbf16, #tpu.memory_space<vmem>>, vector<2x16x128xbf16>,
    %58 = arith.truncf %50 : vector<2x16x128xf32> to vector<2x16x128xbf16>
    %c0_45 = arith.constant 0 : index
    %c0_46 = arith.constant 0 : index
    %c128_47 = arith.constant 128 : index
    %59 = vector.load %arg15[%c0_45, %c0_46, %c128_47] : memref<2x16x384xbf16, #tpu.memory_space<vmem>>, vector<2x16x128xbf16>
    tpu.vector_store %arg15[%c0_45, %c0_46, %c128_47], %58 {strides = array<i32>} : memref<2x16x384xbf16, #tpu.memory_space<vmem>>, vector<2x16x128xbf16>,
    %60 = arith.truncf %55 : vector<2x16x128xf32> to vector<2x16x128xbf16>
    %c0_48 = arith.constant 0 : index
    %c0_49 = arith.constant 0 : index
    %c256_50 = arith.constant 256 : index
    %61 = vector.load %arg15[%c0_48, %c0_49, %c256_50] : memref<2x16x384xbf16, #tpu.memory_space<vmem>>, vector<2x16x128xbf16>
    tpu.vector_store %arg15[%c0_48, %c0_49, %c256_50], %60 {strides = array<i32>} : memref<2x16x384xbf16, #tpu.memory_space<vmem>>, vector<2x16x128xbf16>,
    %c0_51 = arith.constant 0 : index
    %c0_52 = arith.constant 0 : index
    %c0_53 = arith.constant 0 : index
    %62 = vector.load %arg15[%c0_51, %c0_52, %c0_53] : memref<2x16x384xbf16, #tpu.memory_space<vmem>>, vector<2x16x384xbf16>
    %63 = vector.shape_cast %62 : vector<2x16x384xbf16> to vector<32x384xbf16>
    %c0_54 = arith.constant 0 : index
    %c0_55 = arith.constant 0 : index
    %64 = vector.load %arg7[%c0_54, %c0_55] : memref<384x128xbf16, #tpu.memory_space<vmem>>, vector<384x128xbf16>
    %cst_56 = arith.constant dense<0.000000e+00> : vector<32x128xf32>
    %65 = tpu.matmul %63, %64, %cst_56 {dimension_numbers = #tpu.dot_dimension_numbers<[1], [0], [0], [1], [0, 0, 1, 1], [], []>} : vector<32x384xbf16>, vector<384x128xbf16>, vector<32x128xf32> -> vector<32x128xf32>
    %c0_57 = arith.constant 0 : index
    %c0_58 = arith.constant 0 : index
    %66 = vector.load %arg8[%c0_57, %c0_58] : memref<1x128xf32, #tpu.memory_space<vmem>>, vector<1x128xf32>
    %67 = vector.broadcast %66 : vector<1x128xf32> to vector<32x128xf32>
    %68 = arith.addf %65, %67 : vector<32x128xf32>
    %cst_59 = arith.constant 0.000000e+00 : f32
    %69 = vector.broadcast %cst_59 : f32 to vector<32x128xf32>
    %70 = arith.maximumf %68, %69 : vector<32x128xf32>
    %71 = vector.shape_cast %70 : vector<32x128xf32> to vector<2x16x128xf32>
    %cst_60 = arith.constant 0.000000e+00 : f32
    %72 = vector.broadcast %cst_60 : f32 to vector<2x1x128xf32>
    %73 = vector.extract_strided_slice %71 {offsets = [0, 0, 0], sizes = [2, 15, 128], strides = [1, 1, 1]} : vector<2x16x128xf32> to vector<2x15x128xf32>
    %74 = tpu.concatenate %72, %73 in 1 : vector<2x1x128xf32>, vector<2x15x128xf32> -> vector<2x16x128xf32>
    %75 = vector.extract_strided_slice %71 {offsets = [0, 1, 0], sizes = [2, 15, 128], strides = [1, 1, 1]} : vector<2x16x128xf32> to vector<2x15x128xf32>
    %76 = tpu.concatenate %75, %72 in 1 : vector<2x15x128xf32>, vector<2x1x128xf32> -> vector<2x16x128xf32>
    %77 = arith.truncf %74 : vector<2x16x128xf32> to vector<2x16x128xbf16>
    %c0_61 = arith.constant 0 : index
    %c0_62 = arith.constant 0 : index
    %c0_63 = arith.constant 0 : index
    %78 = vector.load %arg15[%c0_61, %c0_62, %c0_63] : memref<2x16x384xbf16, #tpu.memory_space<vmem>>, vector<2x16x128xbf16>
    tpu.vector_store %arg15[%c0_61, %c0_62, %c0_63], %77 {strides = array<i32>} : memref<2x16x384xbf16, #tpu.memory_space<vmem>>, vector<2x16x128xbf16>,
    %79 = arith.truncf %71 : vector<2x16x128xf32> to vector<2x16x128xbf16>
    %c0_64 = arith.constant 0 : index
    %c0_65 = arith.constant 0 : index
    %c128_66 = arith.constant 128 : index
    %80 = vector.load %arg15[%c0_64, %c0_65, %c128_66] : memref<2x16x384xbf16, #tpu.memory_space<vmem>>, vector<2x16x128xbf16>
    tpu.vector_store %arg15[%c0_64, %c0_65, %c128_66], %79 {strides = array<i32>} : memref<2x16x384xbf16, #tpu.memory_space<vmem>>, vector<2x16x128xbf16>,
    %81 = arith.truncf %76 : vector<2x16x128xf32> to vector<2x16x128xbf16>
    %c0_67 = arith.constant 0 : index
    %c0_68 = arith.constant 0 : index
    %c256_69 = arith.constant 256 : index
    %82 = vector.load %arg15[%c0_67, %c0_68, %c256_69] : memref<2x16x384xbf16, #tpu.memory_space<vmem>>, vector<2x16x128xbf16>
    tpu.vector_store %arg15[%c0_67, %c0_68, %c256_69], %81 {strides = array<i32>} : memref<2x16x384xbf16, #tpu.memory_space<vmem>>, vector<2x16x128xbf16>,
    %c0_70 = arith.constant 0 : index
    %c0_71 = arith.constant 0 : index
    %c0_72 = arith.constant 0 : index
    %83 = vector.load %arg15[%c0_70, %c0_71, %c0_72] : memref<2x16x384xbf16, #tpu.memory_space<vmem>>, vector<2x16x384xbf16>
    %84 = vector.shape_cast %83 : vector<2x16x384xbf16> to vector<32x384xbf16>
    %c0_73 = arith.constant 0 : index
    %c0_74 = arith.constant 0 : index
    %85 = vector.load %arg9[%c0_73, %c0_74] : memref<384x128xbf16, #tpu.memory_space<vmem>>, vector<384x128xbf16>
    %cst_75 = arith.constant dense<0.000000e+00> : vector<32x128xf32>
    %86 = tpu.matmul %84, %85, %cst_75 {dimension_numbers = #tpu.dot_dimension_numbers<[1], [0], [0], [1], [0, 0, 1, 1], [], []>} : vector<32x384xbf16>, vector<384x128xbf16>, vector<32x128xf32> -> vector<32x128xf32>
    %c0_76 = arith.constant 0 : index
    %c0_77 = arith.constant 0 : index
    %87 = vector.load %arg10[%c0_76, %c0_77] : memref<1x128xf32, #tpu.memory_space<vmem>>, vector<1x128xf32>
    %88 = vector.broadcast %87 : vector<1x128xf32> to vector<32x128xf32>
    %89 = arith.addf %86, %88 : vector<32x128xf32>
    %90 = arith.addf %47, %89 : vector<32x128xf32>
    %91 = arith.truncf %90 : vector<32x128xf32> to vector<32x128xbf16>
    %c0_78 = arith.constant 0 : index
    %c0_79 = arith.constant 0 : index
    %92 = vector.load %arg12[%c0_78, %c0_79] : memref<128x256xbf16, #tpu.memory_space<vmem>>, vector<128x256xbf16>
    %cst_80 = arith.constant dense<0.000000e+00> : vector<32x256xf32>
    %93 = tpu.matmul %91, %92, %cst_80 {dimension_numbers = #tpu.dot_dimension_numbers<[1], [0], [0], [1], [0, 0, 1, 1], [], []>} : vector<32x128xbf16>, vector<128x256xbf16>, vector<32x256xf32> -> vector<32x256xf32>
    %94 = vector.shape_cast %93 : vector<32x256xf32> to vector<2x16x256xf32>
    %95 = arith.truncf %94 : vector<2x16x256xf32> to vector<2x16x256xbf16>
    %c0_81 = arith.constant 0 : index
    %c0_82 = arith.constant 0 : index
    %96 = vector.load %arg11[%c0_81, %c0_82] : memref<32x16xbf16, #tpu.memory_space<vmem>>, vector<32x16xbf16>
    %c0_83 = arith.constant 0 : index
    %c0_84 = arith.constant 0 : index
    %97 = vector.load %arg13[%c0_83, %c0_84] : memref<1x256xf32, #tpu.memory_space<vmem>>, vector<1x256xf32>
    %98 = vector.extract_strided_slice %95 {offsets = [0, 0, 0], sizes = [1, 16, 256], strides = [1, 1, 1]} : vector<2x16x256xbf16> to vector<1x16x256xbf16>
    %99 = vector.shape_cast %98 : vector<1x16x256xbf16> to vector<16x256xbf16>
    %cst_85 = arith.constant dense<0.000000e+00> : vector<32x256xf32>
    %100 = tpu.matmul %96, %99, %cst_85 {dimension_numbers = #tpu.dot_dimension_numbers<[1], [0], [0], [1], [0, 0, 1, 1], [], []>} : vector<32x16xbf16>, vector<16x256xbf16>, vector<32x256xf32> -> vector<32x256xf32>
    %101 = vector.broadcast %97 : vector<1x256xf32> to vector<32x256xf32>
    %102 = arith.addf %100, %101 : vector<32x256xf32>
    %c0_86 = arith.constant 0 : index
    %c0_87 = arith.constant 0 : index
    %c0_88 = arith.constant 0 : index
    %103 = vector.load %arg14[%c0_86, %c0_87, %c0_88] : memref<2x32x256xf32, #tpu.memory_space<vmem>>, vector<1x32x256xf32>
    %104 = vector.shape_cast %103 : vector<1x32x256xf32> to vector<32x256xf32>
    %105 = vector.shape_cast %102 : vector<32x256xf32> to vector<1x32x256xf32>
    tpu.vector_store %arg14[%c0_86, %c0_87, %c0_88], %105 {strides = array<i32>} : memref<2x32x256xf32, #tpu.memory_space<vmem>>, vector<1x32x256xf32>,
    %106 = vector.extract_strided_slice %95 {offsets = [1, 0, 0], sizes = [1, 16, 256], strides = [1, 1, 1]} : vector<2x16x256xbf16> to vector<1x16x256xbf16>
    %107 = vector.shape_cast %106 : vector<1x16x256xbf16> to vector<16x256xbf16>
    %cst_89 = arith.constant dense<0.000000e+00> : vector<32x256xf32>
    %108 = tpu.matmul %96, %107, %cst_89 {dimension_numbers = #tpu.dot_dimension_numbers<[1], [0], [0], [1], [0, 0, 1, 1], [], []>} : vector<32x16xbf16>, vector<16x256xbf16>, vector<32x256xf32> -> vector<32x256xf32>
    %109 = vector.broadcast %97 : vector<1x256xf32> to vector<32x256xf32>
    %110 = arith.addf %108, %109 : vector<32x256xf32>
    %c1 = arith.constant 1 : index
    %c0_90 = arith.constant 0 : index
    %c0_91 = arith.constant 0 : index
    %111 = vector.load %arg14[%c1, %c0_90, %c0_91] : memref<2x32x256xf32, #tpu.memory_space<vmem>>, vector<1x32x256xf32>
    %112 = vector.shape_cast %111 : vector<1x32x256xf32> to vector<32x256xf32>
    %113 = vector.shape_cast %110 : vector<32x256xf32> to vector<1x32x256xf32>
    tpu.vector_store %arg14[%c1, %c0_90, %c0_91], %113 {strides = array<i32>} : memref<2x32x256xf32, #tpu.memory_space<vmem>>, vector<1x32x256xf32>,
    return
  }
  func.func @transform_0(%arg0: i32) -> (i32, i32, i32) {
    %c0_i32 = arith.constant 0 : i32
    %c0_i32_0 = arith.constant 0 : i32
    %c0_i32_1 = arith.constant 0 : i32
    return %arg0, %c0_i32, %c0_i32_0 : i32, i32, i32
  }
  func.func @transform_1(%arg0: i32) -> (i32, i32, i32) {
    %c0_i32 = arith.constant 0 : i32
    %c0_i32_0 = arith.constant 0 : i32
    %c0_i32_1 = arith.constant 0 : i32
    return %arg0, %c0_i32, %c0_i32_0 : i32, i32, i32
  }
  func.func @transform_2(%arg0: i32) -> (i32, i32) {
    %c0_i32 = arith.constant 0 : i32
    %c0_i32_0 = arith.constant 0 : i32
    %c0_i32_1 = arith.constant 0 : i32
    return %c0_i32, %c0_i32_0 : i32, i32
  }
  func.func @transform_3(%arg0: i32) -> (i32, i32) {
    %c0_i32 = arith.constant 0 : i32
    %c0_i32_0 = arith.constant 0 : i32
    %c0_i32_1 = arith.constant 0 : i32
    return %c0_i32, %c0_i32_0 : i32, i32
  }
  func.func @transform_4(%arg0: i32) -> (i32, i32) {
    %c0_i32 = arith.constant 0 : i32
    %c0_i32_0 = arith.constant 0 : i32
    %c0_i32_1 = arith.constant 0 : i32
    return %c0_i32, %c0_i32_0 : i32, i32
  }
  func.func @transform_5(%arg0: i32) -> (i32, i32) {
    %c0_i32 = arith.constant 0 : i32
    %c0_i32_0 = arith.constant 0 : i32
    %c0_i32_1 = arith.constant 0 : i32
    return %c0_i32, %c0_i32_0 : i32, i32
  }
  func.func @transform_6(%arg0: i32) -> (i32, i32) {
    %c0_i32 = arith.constant 0 : i32
    %c0_i32_0 = arith.constant 0 : i32
    %c0_i32_1 = arith.constant 0 : i32
    return %c0_i32, %c0_i32_0 : i32, i32
  }
  func.func @transform_7(%arg0: i32) -> (i32, i32) {
    %c0_i32 = arith.constant 0 : i32
    %c0_i32_0 = arith.constant 0 : i32
    %c0_i32_1 = arith.constant 0 : i32
    return %c0_i32, %c0_i32_0 : i32, i32
  }
  func.func @transform_8(%arg0: i32) -> (i32, i32) {
    %c0_i32 = arith.constant 0 : i32
    %c0_i32_0 = arith.constant 0 : i32
    %c0_i32_1 = arith.constant 0 : i32
    return %c0_i32, %c0_i32_0 : i32, i32
  }
  func.func @transform_9(%arg0: i32) -> (i32, i32) {
    %c0_i32 = arith.constant 0 : i32
    %c0_i32_0 = arith.constant 0 : i32
    %c0_i32_1 = arith.constant 0 : i32
    return %c0_i32, %c0_i32_0 : i32, i32
  }
  func.func @transform_10(%arg0: i32) -> (i32, i32) {
    %c0_i32 = arith.constant 0 : i32
    %c0_i32_0 = arith.constant 0 : i32
    %c0_i32_1 = arith.constant 0 : i32
    return %c0_i32, %c0_i32_0 : i32, i32
  }
  func.func @transform_11(%arg0: i32) -> (i32, i32) {
    %c0_i32 = arith.constant 0 : i32
    %c0_i32_0 = arith.constant 0 : i32
    %c0_i32_1 = arith.constant 0 : i32
    return %c0_i32, %c0_i32_0 : i32, i32
  }
  func.func @transform_12(%arg0: i32) -> (i32, i32) {
    %c0_i32 = arith.constant 0 : i32
    %c0_i32_0 = arith.constant 0 : i32
    %c0_i32_1 = arith.constant 0 : i32
    return %c0_i32, %c0_i32_0 : i32, i32
  }
  func.func @transform_13(%arg0: i32) -> (i32, i32, i32) {
    %c0_i32 = arith.constant 0 : i32
    %c0_i32_0 = arith.constant 0 : i32
    %c0_i32_1 = arith.constant 0 : i32
    return %arg0, %c0_i32, %c0_i32_0 : i32, i32, i32
  }
}

</mosaic_0001>

<bundles_post_ra>
// kernel: tile.28
= control target key start
LH: loop header
LB: loop body
LE: loop exit
PB: predicated region body
PF: predicated region fallthrough
CT: control target
= control target key end

     0   :  { %2 = vsyncpa [#allocation1], 0  ;;  %s51_s8 = smov [#allocation0]   ;;  %s71_s0 = inlined_call_operand.hbm [shape: f32[8], index: 0, kind: input, shape index: {}]   ;;  %s72_s1 = inlined_call_operand.vmem [shape: f32[16,8], index: 1, kind: output, shape index: {}]  }
   0x1   :  { %s8_s0 = sshll.u32 %s71_s0, 4  ;;  %s10_s9 = sshll.u32 %s51_s8, 4  ;;  %s9_s0 = int_to_ptr.hbm [resolvable:$true] %s8_s0  ;;  %s11_s9 = int_to_ptr.vmem [resolvable:$true] %s10_s9 }
   0x2   :  { %13 = dma.hbm_to_vmem [thread:$0]  %s9_s0, 16, %s11_s9, [#allocation1]  }
   0x3   :  { %49 = dma.done.wait [#allocation1], 16  }
   0x4   :  { %50 = vsyncadd [#allocation1], 4294967280  ;;  %v18_v0 = vld [vmem:[#allocation0] ss:$0 sm:$0xff] }
   0x5   :  { %19 = vst [vmem:[%s72_s1] sm:$0xff] %v18_v0 }
   0x6   :  { %23 = vst [vmem:[%s72_s1 + $0x8] sm:$0xff] %v18_v0 }
   0x7   :  { %22 = vsyncpa [#allocation1], 1 }

// kernel: tile.29
= control target key start
LH: loop header
LB: loop body
LE: loop exit
PB: predicated region body
PF: predicated region fallthrough
CT: control target
= control target key end

     0   :  { %s131_s10 = smov 120   ;;  %s132_s11 = smov 104   ;;  %vm3_vm0 = vcmask 64512   ;;  %vm9_vm1 = vcmask 1048512   ;;  %vm15_vm2 = vcmask 982912   ;;  %vm21_vm3 = vcmask 917312   ;;  %s207_s0 = inlined_call_operand.vmem [shape: f32[16,8], index: 0, kind: input, shape index: {}]   ;;  %s208_s1 = inlined_call_operand.vmem [shape: f32[1,128], index: 1, kind: output, shape index: {}]  }
   0x1   :  { %v101_v0 = vld [vmem:[%s207_s0 + $0xf] sm:$0x1]   ;;  %v103_v1 = vld [vmem:[%s207_s0 + $0xd] sm:$0x1]   ;;  %v105_v2 = vld [vmem:[%s207_s0 + $0xb] sm:$0x1]  }
   0x2   :  { %7 = vrot.lane.b32.xlu0 %v101_v0, %s131_s10  ;;  %19 = vrot.lane.b32.xlu1 %v103_v1, %s132_s11  ;;  %s133_s14 = smov 88   ;;  %v102_v3 = vld [vmem:[%s207_s0 + $0xe] sm:$0x1]   ;;  %v104_v4 = vld [vmem:[%s207_s0 + $0xc] sm:$0x1]   ;;  %s134_s19 = smov 112  }
   0x3   :  { %31 = vrot.lane.b32.xlu2 %v105_v2, %s133_s14  ;;  %s135_s20 = smov 96   ;;  %v106_v5 = vld [vmem:[%s207_s0 + $0xa] sm:$0x1]   ;;  %s136_s23 = smov 80   ;;  %v107_v6 = vld [vmem:[%s207_s0 + $0x9] sm:$0x1]  }
   0x4   :  { %v108_v7 = vld [vmem:[%s207_s0 + $0x8] sm:$0x1]   ;;  %s137_s28 = smov 72   ;;  %s138_s29 = smov 64   ;;  %v109_v8 = vld [vmem:[%s207_s0 + $0x7] sm:$0x1]  }
   0x5   :  { %s139_s3 = smov 56   ;;  %v110_v9 = vld [vmem:[%s207_s0 + $0x6] sm:$0x1]   ;;  %v111_v10 = vld [vmem:[%s207_s0 + $0x5] sm:$0x1]   ;;  %s140_s8 = smov 48  }
   0x6   :  { %s141_s9 = smov 40   ;;  %v112_v11 = vld [vmem:[%s207_s0 + $0x4] sm:$0x1]   ;;  %s142_s12 = smov 32   ;;  %v113_v12 = vld [vmem:[%s207_s0 + $0x3] sm:$0x1]  }
   0x7   :  { %v114_v13 = vld [vmem:[%s207_s0 + $0x2] sm:$0x1]   ;;  %s143_s17 = smov 24   ;;  %s144_s18 = smov 16   ;;  %v115_v14 = vld [vmem:[%s207_s0 + $0x1] sm:$0x1]  }
   0x8   :  { %s145_s21 = smov 8   ;;  %v2_v15 = vld [vmem:[%s207_s0] sm:$0x1]   ;;  %vm27_vm4 = vcmask 851712   ;;  %vm33_vm5 = vcmask 786112   ;;  %vm39_vm6 = vcmask 720512  }
   0x9   :  { %4 = vst.msk [vmem:[#allocation0] sm:$0x1] %vm3_vm0, %v2_v15   ;;  %vm45_vm7 = vcmask 654912   ;;  %vm51_vm8 = vcmask 589312   ;;  %vm57_vm9 = vcmask 523712   ;;  %vm63_vm10 = vcmask 458112  }
   0xa   :  { %13 = vrot.lane.b32.xlu0 %v102_v3, %s134_s19  ;;  %25 = vrot.lane.b32.xlu1 %v104_v4, %s135_s20  ;;  %vm69_vm11 = vcmask 392512   ;;  %vm75_vm12 = vcmask 326912   ;;  %vm81_vm13 = vcmask 261312   ;;  %vm87_vm14 = vcmask 195712  }
   0xb   :  { %37 = vrot.lane.b32.xlu2 %v106_v5, %s136_s23  ;;  %vm93_vm15 = vcmask 130112  }
  0x12   :  { %43 = vrot.lane.b32.xlu0 %v107_v6, %s137_s28  ;;  %49 = vrot.lane.b32.xlu1 %v108_v7, %s138_s29 }
  0x13   :  { %55 = vrot.lane.b32.xlu2 %v109_v8, %s139_s3 }
  0x1a   :  { %61 = vrot.lane.b32.xlu0 %v110_v9, %s140_s8  ;;  %67 = vrot.lane.b32.xlu1 %v111_v10, %s141_s9 }
  0x1b   :  { %73 = vrot.lane.b32.xlu2 %v112_v11, %s142_s12 }
  0x22   :  { %79 = vrot.lane.b32.xlu0 %v113_v12, %s143_s17  ;;  %85 = vrot.lane.b32.xlu1 %v114_v13, %s144_s18 }
  0x23   :  { %91 = vrot.lane.b32.xlu2 %v115_v14, %s145_s21 }
  0x5d   :  { %v32_v16 = vpop.permute.xlu2 %31  }
  0x65   :  { %v38_v17 = vpop.permute.xlu2 %37  }
  0x6d   :  { %v56_v18 = vpop.permute.xlu2 %55  }
  0x74   :  { %v8_v19 = vpop.permute.xlu0 %7   ;;  %v20_v20 = vpop.permute.xlu1 %19  }
  0x75   :  { %10 = vst.msk [vmem:[#allocation0] sm:$0x1] %vm9_vm1, %v8_v19   ;;  %v74_v21 = vpop.permute.xlu2 %73  }
  0x7c   :  { %v14_v22 = vpop.permute.xlu0 %13   ;;  %v26_v23 = vpop.permute.xlu1 %25  }
  0x7d   :  { %16 = vst.msk [vmem:[#allocation0] sm:$0x1] %vm15_vm2, %v14_v22   ;;  %v92_v24 = vpop.permute.xlu2 %91  }
  0x7e   :  { %22 = vst.msk [vmem:[#allocation0] sm:$0x1] %vm21_vm3, %v20_v20  }
  0x7f   :  { %28 = vst.msk [vmem:[#allocation0] sm:$0x1] %vm27_vm4, %v26_v23  }
  0x80   :  { %34 = vst.msk [vmem:[#allocation0] sm:$0x1] %vm33_vm5, %v32_v16  }
  0x81   :  { %40 = vst.msk [vmem:[#allocation0] sm:$0x1] %vm39_vm6, %v38_v17  }
  0x84   :  { %v44_v25 = vpop.permute.xlu0 %43   ;;  %v50_v26 = vpop.permute.xlu1 %49  }
  0x85   :  { %46 = vst.msk [vmem:[#allocation0] sm:$0x1] %vm45_vm7, %v44_v25  }
  0x86   :  { %52 = vst.msk [vmem:[#allocation0] sm:$0x1] %vm51_vm8, %v50_v26  }
  0x87   :  { %58 = vst.msk [vmem:[#allocation0] sm:$0x1] %vm57_vm9, %v56_v18  }
  0x8c   :  { %v62_v27 = vpop.permute.xlu0 %61   ;;  %v68_v28 = vpop.permute.xlu1 %67  }
  0x8d   :  { %64 = vst.msk [vmem:[#allocation0] sm:$0x1] %vm63_vm10, %v62_v27  }
  0x8e   :  { %70 = vst.msk [vmem:[#allocation0] sm:$0x1] %vm69_vm11, %v68_v28  }
  0x8f   :  { %76 = vst.msk [vmem:[#allocation0] sm:$0x1] %vm75_vm12, %v74_v21  }
  0x94   :  { %v80_v29 = vpop.permute.xlu0 %79   ;;  %v86_v30 = vpop.permute.xlu1 %85  }
  0x95   :  { %82 = vst.msk [vmem:[#allocation0] sm:$0x1] %vm81_vm13, %v80_v29  }
  0x96   :  { %88 = vst.msk [vmem:[#allocation0] sm:$0x1] %vm87_vm14, %v86_v30  }
  0x97   :  { %94 = vst.msk [vmem:[#allocation0] sm:$0x1] %vm93_vm15, %v92_v24  }
  0x9e   :  { %v97_v31 = vld [vmem:[#allocation0] sm:$0x1] }
  0x9f   :  { %100 = vst [vmem:[%s208_s1] sm:$0x1] %v97_v31 }

// kernel: tile.48
= control target key start
LH: loop header
LB: loop body
LE: loop exit
PB: predicated region body
PF: predicated region fallthrough
CT: control target
= control target key end

     0   :  { %s40_s0 = inlined_call_operand.vmem [shape: f32[8], index: 0, kind: input, shape index: {}]   ;;  %s41_s1 = inlined_call_operand.vmem [shape: f32[32,8], index: 1, kind: output, shape index: {}]  }
   0x1   :  { %v4_v0 = vld [vmem:[%s40_s0] ss:$0 sm:$0xff] }
   0x2   :  { %5 = vst [vmem:[%s41_s1] sm:$0xff] %v4_v0 }
   0x3   :  { %12 = vst [vmem:[%s41_s1 + $0x8] sm:$0xff] %v4_v0 }
   0x4   :  { %13 = vst [vmem:[%s41_s1 + $0x10] sm:$0xff] %v4_v0 }
   0x5   :  { %14 = vst [vmem:[%s41_s1 + $0x18] sm:$0xff] %v4_v0 }

// kernel: tile.49
= control target key start
LH: loop header
LB: loop body
LE: loop exit
PB: predicated region body
PF: predicated region fallthrough
CT: control target
= control target key end

     0   :  { %s7_s6 = smov 3  ;;  %s21_s9 = smov 3  ;;  %vm4_vm0 = vcmask 64512   ;;  %vm11_vm1 = vcmask 1048512   ;;  %vm18_vm2 = vcmask 982912   ;;  %vm25_vm3 = vcmask 917312   ;;  %s233_s0 = inlined_call_operand.vmem [shape: f32[32,8], index: 0, kind: input, shape index: {}]   ;;  %s234_s1 = inlined_call_operand.vmem [shape: f32[1,256], index: 1, kind: output, shape index: {}]  }
   0x1   :  { %v123_v0 = vld [vmem:[%s233_s0 + $0xf] ss:$16 sm:%s7_s6]   ;;  %s154_s10 = smov 120   ;;  %v125_v1 = vld [vmem:[%s233_s0 + $0xd] ss:$16 sm:%s21_s9]   ;;  %s155_s13 = smov 104  }
   0x2   :  { %9 = vrot.lane.b32.xlu0 %v123_v0, %s154_s10  ;;  %23 = vrot.lane.b32.xlu1 %v125_v1, %s155_s13  ;;  %s14_s14 = smov 3  ;;  %s28_s15 = smov 3  ;;  %vm32_vm4 = vcmask 851712   ;;  %vm39_vm5 = vcmask 786112   ;;  %vm46_vm6 = vcmask 720512   ;;  %vm53_vm7 = vcmask 654912  }
   0x3   :  { %v124_v2 = vld [vmem:[%s233_s0 + $0xe] ss:$16 sm:%s14_s14]   ;;  %v126_v3 = vld [vmem:[%s233_s0 + $0xc] ss:$16 sm:%s28_s15]   ;;  %s35_s20 = smov 3  ;;  %s156_s23 = smov 112  }
   0x4   :  { %v127_v4 = vld [vmem:[%s233_s0 + $0xb] ss:$16 sm:%s35_s20]   ;;  %s157_s24 = smov 88   ;;  %s158_s25 = smov 96   ;;  %vm60_vm8 = vcmask 589312   ;;  %vm67_vm9 = vcmask 523712  }
   0x5   :  { %37 = vrot.lane.b32.xlu2 %v127_v4, %s157_s24  ;;  %s49_s26 = smov 3  ;;  %s42_s27 = smov 3  ;;  %vm74_vm10 = vcmask 458112   ;;  %vm81_vm11 = vcmask 392512   ;;  %vm88_vm12 = vcmask 326912   ;;  %vm95_vm13 = vcmask 261312  }
   0x6   :  { %s56_s28 = smov 3  ;;  %v129_v5 = vld [vmem:[%s233_s0 + $0x9] ss:$16 sm:%s49_s26]   ;;  %v128_v6 = vld [vmem:[%s233_s0 + $0xa] ss:$16 sm:%s42_s27]   ;;  %s159_s6 = smov 72  }
   0x7   :  { %v130_v7 = vld [vmem:[%s233_s0 + $0x8] ss:$16 sm:%s56_s28]   ;;  %s160_s7 = smov 80   ;;  %s161_s8 = smov 64   ;;  %vm102_vm14 = vcmask 195712   ;;  %vm109_vm15 = vcmask 130112  }
   0x8   :  { %s70_s9 = smov 3  ;;  %s63_s10 = smov 3 }
   0x9   :  { %s77_s11 = smov 3  ;;  %v132_v8 = vld [vmem:[%s233_s0 + $0x6] ss:$16 sm:%s70_s9]   ;;  %v131_v9 = vld [vmem:[%s233_s0 + $0x7] ss:$16 sm:%s63_s10]   ;;  %s162_s18 = smov 48  }
   0xa   :  { %16 = vrot.lane.b32.xlu0 %v124_v2, %s156_s23  ;;  %30 = vrot.lane.b32.xlu1 %v126_v3, %s158_s25  ;;  %v133_v10 = vld [vmem:[%s233_s0 + $0x5] ss:$16 sm:%s77_s11]   ;;  %s163_s19 = smov 56   ;;  %s164_s20 = smov 40  }
   0xb   :  { %s91_s21 = smov 3  ;;  %s84_s22 = smov 3 }
   0xc   :  { %s98_s23 = smov 3  ;;  %v135_v11 = vld [vmem:[%s233_s0 + $0x3] ss:$16 sm:%s91_s21]   ;;  %v134_v12 = vld [vmem:[%s233_s0 + $0x4] ss:$16 sm:%s84_s22]   ;;  %s165_s30 = smov 24  }
   0xd   :  { %44 = vrot.lane.b32.xlu2 %v128_v6, %s160_s7  ;;  %v136_v13 = vld [vmem:[%s233_s0 + $0x2] ss:$16 sm:%s98_s23]   ;;  %s166_s2 = smov 32   ;;  %s167_s3 = smov 16  }
   0xe   :  { %s105_s4 = smov 3  ;;  %s168_s7 = smov 8  }
   0xf   :  { %v137_v14 = vld [vmem:[%s233_s0 + $0x1] ss:$16 sm:%s105_s4]  }
  0x12   :  { %51 = vrot.lane.b32.xlu0 %v129_v5, %s159_s6  ;;  %58 = vrot.lane.b32.xlu1 %v130_v7, %s161_s8  ;;  %s2_s8 = smov 3 }
  0x13   :  { %v3_v15 = vld [vmem:[%s233_s0] ss:$16 sm:%s2_s8]  }
  0x14   :  { %5 = vst.msk [vmem:[#allocation0] ss:$8 sm:$0x3] %vm4_vm0, %v3_v15  }
  0x15   :  { %65 = vrot.lane.b32.xlu2 %v131_v9, %s163_s19 }
  0x1a   :  { %72 = vrot.lane.b32.xlu0 %v132_v8, %s162_s18  ;;  %79 = vrot.lane.b32.xlu1 %v133_v10, %s164_s20 }
  0x1d   :  { %86 = vrot.lane.b32.xlu2 %v134_v12, %s166_s2 }
  0x22   :  { %93 = vrot.lane.b32.xlu0 %v135_v11, %s165_s30  ;;  %100 = vrot.lane.b32.xlu1 %v136_v13, %s167_s3 }
  0x25   :  { %107 = vrot.lane.b32.xlu2 %v137_v14, %s168_s7 }
  0x5f   :  { %v38_v16 = vpop.permute.xlu2 %37  }
  0x67   :  { %v45_v17 = vpop.permute.xlu2 %44  }
  0x6f   :  { %v66_v19 = vpop.permute.xlu2 %65  }
  0x74   :  { %v10_v18 = vpop.permute.xlu0 %9   ;;  %v24_v20 = vpop.permute.xlu1 %23  }
  0x75   :  { %12 = vst.msk [vmem:[#allocation0] ss:$8 sm:$0x3] %vm11_vm1, %v10_v18  }
  0x77   :  { %v87_v22 = vpop.permute.xlu2 %86  }
  0x7c   :  { %v17_v21 = vpop.permute.xlu0 %16   ;;  %v31_v23 = vpop.permute.xlu1 %30  }
  0x7d   :  { %19 = vst.msk [vmem:[#allocation0] ss:$8 sm:$0x3] %vm18_vm2, %v17_v21  }
  0x7e   :  { %26 = vst.msk [vmem:[#allocation0] ss:$8 sm:$0x3] %vm25_vm3, %v24_v20  }
  0x7f   :  { %33 = vst.msk [vmem:[#allocation0] ss:$8 sm:$0x3] %vm32_vm4, %v31_v23   ;;  %v108_v25 = vpop.permute.xlu2 %107  }
  0x80   :  { %40 = vst.msk [vmem:[#allocation0] ss:$8 sm:$0x3] %vm39_vm5, %v38_v16  }
  0x81   :  { %47 = vst.msk [vmem:[#allocation0] ss:$8 sm:$0x3] %vm46_vm6, %v45_v17  }
  0x84   :  { %v52_v24 = vpop.permute.xlu0 %51   ;;  %v59_v26 = vpop.permute.xlu1 %58  }
  0x85   :  { %54 = vst.msk [vmem:[#allocation0] ss:$8 sm:$0x3] %vm53_vm7, %v52_v24  }
  0x86   :  { %61 = vst.msk [vmem:[#allocation0] ss:$8 sm:$0x3] %vm60_vm8, %v59_v26  }
  0x87   :  { %68 = vst.msk [vmem:[#allocation0] ss:$8 sm:$0x3] %vm67_vm9, %v66_v19  }
  0x8c   :  { %v73_v27 = vpop.permute.xlu0 %72   ;;  %v80_v28 = vpop.permute.xlu1 %79  }
  0x8d   :  { %75 = vst.msk [vmem:[#allocation0] ss:$8 sm:$0x3] %vm74_vm10, %v73_v27  }
  0x8e   :  { %82 = vst.msk [vmem:[#allocation0] ss:$8 sm:$0x3] %vm81_vm11, %v80_v28  }
  0x8f   :  { %89 = vst.msk [vmem:[#allocation0] ss:$8 sm:$0x3] %vm88_vm12, %v87_v22  }
  0x94   :  { %v94_v29 = vpop.permute.xlu0 %93   ;;  %v101_v30 = vpop.permute.xlu1 %100  }
  0x95   :  { %96 = vst.msk [vmem:[#allocation0] ss:$8 sm:$0x3] %vm95_vm13, %v94_v29  }
  0x96   :  { %103 = vst.msk [vmem:[#allocation0] ss:$8 sm:$0x3] %vm102_vm14, %v101_v30  }
  0x97   :  { %110 = vst.msk [vmem:[#allocation0] ss:$8 sm:$0x3] %vm109_vm15, %v108_v25  }
  0x9e   :  { %v113_v31 = vld [vmem:[#allocation0] sm:$0x1]  ;;  %v118_v32 = vld [vmem:[#allocation0 + $0x8] sm:$0x1] }
  0x9f   :  { %116 = vst [vmem:[%s234_s1] sm:$0x1] %v113_v31 }
  0xa0   :  { %138 = vst [vmem:[%s234_s1 + $0x1] sm:$0x1] %v118_v32 }

</bundles_post_ra>
